<compile_context>
chip_gen: v6e
topology: v6e:2x2x1
jax: 0.10.0
libtpu: 0.0.40
codegen_flags: <defaults>
</compile_context>

<pallas_src>
import functools

import jax
import jax.numpy as jnp
from jax.experimental import pallas as pl
from jax.experimental.pallas import tpu as pltpu

EPS = 1e-5  # PyTorch BatchNorm1d default eps


def _round_up(x, m):
    return ((x + m - 1) // m) * m


def _vmem_capacity_bytes():
    try:
        info = pltpu.get_tpu_info()
        cap = int(getattr(info, "vmem_capacity_bytes", 0))
        if cap > 0:
            return cap
    except Exception:
        pass
    return 64 * 1024 * 1024  # conservative fallback (v7x per-TC VMEM)


_VMEM_CAP_BYTES = _vmem_capacity_bytes()


# ---------------- shared fused conv + bias + ReLU (per L tile) ----------------
def _conv_bias_relu(x_ref, w_ref, b_ref, *, taps, c_in_pad, tile_l):
    """x_ref: (1,1,c_sub,span_pad) bf16, w_ref: (k,c_out_pad,c_in_pad) bf16, b_ref: (c_out_pad,1) f32.
    Returns relu(conv + bias) as (c_out_pad, tile_l) f32."""
    xt = x_ref[0, 0]                                   # (c_sub, span_pad) bf16
    acc = None
    for d, (g, q) in enumerate(taps):                  # static unrolled per-tap matmuls
        xd = xt[g * c_in_pad:(g + 1) * c_in_pad, q:q + tile_l]
        part = jnp.dot(w_ref[d], xd, preferred_element_type=jnp.float32)
        acc = part if acc is None else acc + part
    y = acc + b_ref[...]                               # (c_out_pad,1) broadcast along lanes
    return jnp.maximum(y, 0.0)                         # ReLU


# ---------------- Phase 1: per-tile batch-stat partials (no pre-BN writeback) ----------------
def _stats_kernel(x_ref, w_ref, b_ref, sum_ref, ssq_ref, *, taps, c_in_pad, tile_l, l_out):
    y = _conv_bias_relu(x_ref, w_ref, b_ref, taps=taps, c_in_pad=c_in_pad, tile_l=tile_l)

    def _write(yv):
        sum_ref[...] = jnp.sum(yv, axis=1, keepdims=True)[None, None]
        ssq_ref[...] = jnp.sum(yv * yv, axis=1, keepdims=True)[None, None]

    rem = l_out % tile_l
    if rem == 0:               # static: no padded lane columns anywhere
        _write(y)
    else:                      # mask only on the last L tile (review item)
        j = pl.program_id(1)
        last = pl.num_programs(1) - 1

        @pl.when(j == last)
        def _():
            col = jax.lax.broadcasted_iota(jnp.int32, y.shape, 1)
            _write(jnp.where(col < rem, y, 0.0))

        @pl.when(j != last)
        def _():
            _write(y)


# ---------------- Phase 2: recompute conv, fuse bias+ReLU+folded-BN, write final layout ------
def _apply_kernel(x_ref, w_ref, b_ref, scale_ref, shift_ref, o_ref, *,
                  taps, c_in_pad, tile_l, c_out):
    y = _conv_bias_relu(x_ref, w_ref, b_ref, taps=taps, c_in_pad=c_in_pad, tile_l=tile_l)
    out = y * scale_ref[...] + shift_ref[...]
    o_ref[0] = out[:c_out].astype(o_ref.dtype)


@functools.partial(jax.jit, static_argnames=("kernel_size", "stride", "dilation"))
def textconv_forward(x, weight, bias, gamma, beta, *, kernel_size, stride, dilation):
    """x: (N, C_in, L)  weight: (C_out, C_in, k)  bias/gamma/beta: (C_out,) -> (N, C_out, L_out)"""
    n, c_in, l = x.shape
    c_out = weight.shape[0]
    pad = int((kernel_size - 1) * dilation / 2)
    assert 2 * pad == dilation * (kernel_size - 1)
    l_out = (l + 2 * pad - dilation * (kernel_size - 1) - 1) // stride + 1

    # Per-tap residue decomposition: offset d*dilation = q*stride + r  =>  output l for tap d
    # reads sub_r[l + q], where sub_r is x_pad subsampled with phase r.  Stacking the distinct
    # sub_r sequences along channels gives a compact (non kernel_size-inflated) buffer and lets
    # the kernel do im2col implicitly via static shifted lane slices.
    offs = [d * dilation for d in range(kernel_size)]
    residues = sorted({o % stride for o in offs})
    res_idx = {r: i for i, r in enumerate(residues)}
    taps = tuple((res_idx[o % stride], o // stride) for o in offs)   # (group, lane offset) / tap
    q_max = max(q for _, q in taps)
    n_res = len(residues)

    c_in_pad = _round_up(c_in, 16)      # bf16 packs 16 rows per vreg (MXU operand sublanes)
    c_out_pad = _round_up(c_out, 16)
    c_sub = n_res * c_in_pad

    # ---- generation-aware tile sizing (lane-dense tiles along L_out) ----
    bytes_per_lane = (2 * c_sub * 2                   # double-buffered x-span tiles (bf16)
                      + 2 * c_out * 4                 # double-buffered output tiles (f32)
                      + c_sub * 2                     # loaded x tile value
                      + kernel_size * c_in_pad * 2    # per-tap lane-shifted slices (bf16)
                      + 4 * c_out_pad * 4)            # acc / y / affine temporaries (f32)
    if _VMEM_CAP_BYTES <= 64 * 1024 * 1024:           # v7x: 64 MiB physical per TC
        ws_budget, vmem_limit = 16 * 1024 * 1024, 40 * 1024 * 1024
    else:                                             # v5e / v6e: 128 MiB physical
        ws_budget, vmem_limit = 32 * 1024 * 1024, 72 * 1024 * 1024
    tile_cap = max(128, (ws_budget // bytes_per_lane) // 128 * 128)
    tile_l = min(tile_cap, 32768, _round_up(l_out, 128))
    l_out_pad = _round_up(l_out, tile_l)
    num_l_tiles = l_out_pad // tile_l
    span_pad = tile_l if q_max == 0 else _round_up(tile_l + q_max, 128)

    # ---- build the compact, per-tile overlapped x "span" buffer (bf16) ----
    x_p = jnp.pad(x, ((0, 0), (0, 0), (pad, pad))).astype(jnp.bfloat16)  # (N, C_in, L+2p)
    l_need = (num_l_tiles - 1) * tile_l + span_pad
    groups = []
    for r in residues:
        sub = x_p[:, :, r::stride]                               # stride-subsampled phase r
        lr = sub.shape[2]
        if lr < l_need:
            sub = jnp.pad(sub, ((0, 0), (0, 0), (0, l_need - lr)))
        elif lr > l_need:
            sub = sub[:, :, :l_need]
        groups.append(jnp.pad(sub, ((0, 0), (0, c_in_pad - c_in), (0, 0))))
    xg = groups[0] if n_res == 1 else jnp.concatenate(groups, axis=1)    # (N, c_sub, l_need)
    x_spans = jnp.stack(
        [xg[:, :, j * tile_l:j * tile_l + span_pad] for j in range(num_l_tiles)],
        axis=1)                                                  # (N, num_l_tiles, c_sub, span_pad)

    # ---- weights / bias (tiny, full-array blocks) ----
    w_taps = jnp.transpose(weight, (2, 0, 1))                    # (k, C_out, C_in)
    w_taps = jnp.pad(w_taps, ((0, 0), (0, c_out_pad - c_out),
                              (0, c_in_pad - c_in))).astype(jnp.bfloat16)
    b_p = jnp.pad(bias.astype(jnp.float32), (0, c_out_pad - c_out)).reshape(c_out_pad, 1)

    x_spec = pl.BlockSpec((1, 1, c_sub, span_pad), lambda b, j: (b, j, 0, 0))
    w_spec = pl.BlockSpec((kernel_size, c_out_pad, c_in_pad), lambda b, j: (0, 0, 0))
    col_spec = pl.BlockSpec((c_out_pad, 1), lambda b, j: (0, 0))

    # ---------------- Phase 1: batch statistics (parallel over (n, L tiles)) ----------------
    cost1 = pl.CostEstimate(
        flops=2 * c_out_pad * c_in_pad * kernel_size * n * l_out_pad
              + 6 * c_out_pad * n * l_out_pad,
        transcendentals=0,
        bytes_accessed=int(x_spans.size * 2 + w_taps.size * 2 + b_p.size * 4
                           + 2 * n * num_l_tiles * c_out_pad * 4))
    sums, ssqs = pl.pallas_call(
        functools.partial(_stats_kernel, taps=taps, c_in_pad=c_in_pad,
                          tile_l=tile_l, l_out=l_out),
        out_shape=(
            jax.ShapeDtypeStruct((n, num_l_tiles, c_out_pad, 1), jnp.float32),
            jax.ShapeDtypeStruct((n, num_l_tiles, c_out_pad, 1), jnp.float32),
        ),
        grid=(n, num_l_tiles),
        in_specs=[x_spec, w_spec, col_spec],
        out_specs=(
            pl.BlockSpec((1, 1, c_out_pad, 1), lambda b, j: (b, j, 0, 0)),
            pl.BlockSpec((1, 1, c_out_pad, 1), lambda b, j: (b, j, 0, 0)),
        ),
        compiler_params=pltpu.CompilerParams(
            dimension_semantics=("parallel", "parallel"),   # per-tile partials -> TC-shardable
            vmem_limit_bytes=vmem_limit),
        cost_estimate=cost1,
    )(x_spans, w_taps, b_p)

    # ---- fold BN into a per-channel affine (tiny f32 math in the wrapper) ----
    r_total = n * l_out
    inv_r = 1.0 / float(r_total)
    sum_c = jnp.sum(sums, axis=(0, 1))                           # (c_out_pad, 1)
    ssq_c = jnp.sum(ssqs, axis=(0, 1))
    mean = sum_c * inv_r
    var = jnp.maximum(ssq_c * inv_r - mean * mean, 0.0)          # biased batch variance
    inv_std = jax.lax.rsqrt(var + EPS)
    g_p = jnp.pad(gamma.astype(jnp.float32), (0, c_out_pad - c_out)).reshape(c_out_pad, 1)
    be_p = jnp.pad(beta.astype(jnp.float32), (0, c_out_pad - c_out)).reshape(c_out_pad, 1)
    scale = g_p * inv_std
    shift = be_p - mean * scale

    # ---------------- Phase 2: recompute conv, apply affine, write final layout --------------
    cost2 = pl.CostEstimate(
        flops=2 * c_out_pad * c_in_pad * kernel_size * n * l_out_pad
              + 6 * c_out_pad * n * l_out_pad,
        transcendentals=0,
        bytes_accessed=int(x_spans.size * 2 + w_taps.size * 2 + 3 * c_out_pad * 4
                           + n * c_out * l_out_pad * 4))
    out_full = pl.pallas_call(
        functools.partial(_apply_kernel, taps=taps, c_in_pad=c_in_pad,
                          tile_l=tile_l, c_out=c_out),
        out_shape=jax.ShapeDtypeStruct((n, c_out, l_out_pad), jnp.float32),
        grid=(n, num_l_tiles),
        in_specs=[x_spec, w_spec, col_spec, col_spec, col_spec],
        out_specs=pl.BlockSpec((1, c_out, tile_l), lambda b, j: (b, 0, j)),
        compiler_params=pltpu.CompilerParams(
            dimension_semantics=("parallel", "parallel"),
            vmem_limit_bytes=vmem_limit),
        cost_estimate=cost2,
    )(x_spans, w_taps, b_p, scale, shift)

    # Final layout already (N, C_out, L_out_pad); only trim trailing lane padding if present.
    return out_full if l_out_pad == l_out else out_full[:, :, :l_out]


def _reference_forward(x, weight, bias, gamma, beta, *, kernel_size, stride, dilation):
    pad = int((kernel_size - 1) * dilation / 2)
    y = jax.lax.conv_general_dilated(
        x.astype(jnp.float32), weight.astype(jnp.float32),
        window_strides=(stride,), padding=[(pad, pad)],
        rhs_dilation=(dilation,), dimension_numbers=("NCH", "OIH", "NCH"))
    y = y + bias[None, :, None]
    y = jnp.maximum(y, 0.0)
    mean = jnp.mean(y, axis=(0, 2), keepdims=True)
    var = jnp.mean((y - mean) ** 2, axis=(0, 2), keepdims=True)
    return (y - mean) / jnp.sqrt(var + EPS) * gamma[None, :, None] + beta[None, :, None]


if __name__ == "__main__":
    # Small shapes consistent with the module: Conv1d over (N, C_in, L).
    N, C_IN, C_OUT, L = 2, 4, 8, 16
    KERNEL_SIZE, STRIDE, DILATION = 3, 1, 1

    key = jax.random.PRNGKey(0)
    kx, kw, kb, kg, kbe = jax.random.split(key, 5)
    # x / weight pre-rounded to bf16-representable values so the f32 reference isolates
    # layout / indexing / BN math from the intentional bf16 MXU-input quantization.
    x = jax.random.normal(kx, (N, C_IN, L), dtype=jnp.float32)
    x = x.astype(jnp.bfloat16).astype(jnp.float32)
    weight = jax.random.normal(kw, (C_OUT, C_IN, KERNEL_SIZE), dtype=jnp.float32) * 0.3
    weight = weight.astype(jnp.bfloat16).astype(jnp.float32)
    bias = jax.random.normal(kb, (C_OUT,), dtype=jnp.float32) * 0.1
    gamma = 1.0 + 0.1 * jax.random.normal(kg, (C_OUT,), dtype=jnp.float32)
    beta = 0.1 * jax.random.normal(kbe, (C_OUT,), dtype=jnp.float32)

    out = textconv_forward(
        x, weight, bias, gamma, beta,
        kernel_size=KERNEL_SIZE, stride=STRIDE, dilation=DILATION)
    out = jax.block_until_ready(out)

    ref = _reference_forward(
        x, weight, bias, gamma, beta,
        kernel_size=KERNEL_SIZE, stride=STRIDE, dilation=DILATION)
    assert out.shape == (N, C_OUT, L), out.shape
    max_err = float(jnp.max(jnp.abs(out - ref)))
    assert jnp.allclose(out, ref, atol=2e-3, rtol=2e-3), max_err

    print("KERNEL_OK")
</pallas_src>

<mosaic_0001>
module attributes {stable_mosaic.version = 11 : i64} {
  func.func @_stats_kernel(%arg0: i32, %arg1: i32, %arg2: memref<1x1x16x256xbf16, #tpu.memory_space<vmem>>, %arg3: memref<3x16x16xbf16, #tpu.memory_space<vmem>>, %arg4: memref<16x1xf32, #tpu.memory_space<vmem>>, %arg5: memref<1x1x16x1xf32, #tpu.memory_space<vmem>>, %arg6: memref<1x1x16x1xf32, #tpu.memory_space<vmem>>) attributes {dimension_semantics = [#tpu.dimension_semantics<parallel>, #tpu.dimension_semantics<parallel>], iteration_bounds = array<i64: 2, 1>, scalar_prefetch = 0 : i64, scratch_operands = 0 : i64, tpu.core_type = #tpu.core_type<tc>, window_params = [{transform_indices = @transform_0, window_bounds = array<i64: 1, 1, 16, 256>}, {pipeline_mode = #tpu.pipeline_mode<synchronous>, transform_indices = @transform_1, window_bounds = array<i64: 3, 16, 16>}, {pipeline_mode = #tpu.pipeline_mode<synchronous>, transform_indices = @transform_2, window_bounds = array<i64: 16, 1>}, {transform_indices = @transform_3, window_bounds = array<i64: 1, 1, 16, 1>}, {transform_indices = @transform_4, window_bounds = array<i64: 1, 1, 16, 1>}]} {
    %c0 = arith.constant 0 : index
    %c0_0 = arith.constant 0 : index
    %c0_1 = arith.constant 0 : index
    %c0_2 = arith.constant 0 : index
    %0 = vector.load %arg2[%c0, %c0_0, %c0_1, %c0_2] : memref<1x1x16x256xbf16, #tpu.memory_space<vmem>>, vector<1x1x16x256xbf16>
    %1 = vector.shape_cast %0 : vector<1x1x16x256xbf16> to vector<16x256xbf16>
    %2 = vector.extract_strided_slice %1 {offsets = [0, 0], sizes = [16, 128], strides = [1, 1]} : vector<16x256xbf16> to vector<16x128xbf16>
    %c0_3 = arith.constant 0 : index
    %c0_4 = arith.constant 0 : index
    %c0_5 = arith.constant 0 : index
    %3 = vector.load %arg3[%c0_3, %c0_4, %c0_5] : memref<3x16x16xbf16, #tpu.memory_space<vmem>>, vector<1x16x16xbf16>
    %4 = vector.shape_cast %3 : vector<1x16x16xbf16> to vector<16x16xbf16>
    %cst = arith.constant dense<0.000000e+00> : vector<16x128xf32>
    %5 = tpu.matmul %4, %2, %cst {dimension_numbers = #tpu.dot_dimension_numbers<[1], [0], [0], [1], [0, 0, 1, 1], [], []>} : vector<16x16xbf16>, vector<16x128xbf16>, vector<16x128xf32> -> vector<16x128xf32>
    %6 = vector.extract_strided_slice %1 {offsets = [0, 1], sizes = [16, 128], strides = [1, 1]} : vector<16x256xbf16> to vector<16x128xbf16>
    %c1 = arith.constant 1 : index
    %c0_6 = arith.constant 0 : index
    %c0_7 = arith.constant 0 : index
    %7 = vector.load %arg3[%c1, %c0_6, %c0_7] : memref<3x16x16xbf16, #tpu.memory_space<vmem>>, vector<1x16x16xbf16>
    %8 = vector.shape_cast %7 : vector<1x16x16xbf16> to vector<16x16xbf16>
    %cst_8 = arith.constant dense<0.000000e+00> : vector<16x128xf32>
    %9 = tpu.matmul %8, %6, %cst_8 {dimension_numbers = #tpu.dot_dimension_numbers<[1], [0], [0], [1], [0, 0, 1, 1], [], []>} : vector<16x16xbf16>, vector<16x128xbf16>, vector<16x128xf32> -> vector<16x128xf32>
    %10 = arith.addf %5, %9 : vector<16x128xf32>
    %11 = vector.extract_strided_slice %1 {offsets = [0, 2], sizes = [16, 128], strides = [1, 1]} : vector<16x256xbf16> to vector<16x128xbf16>
    %c2 = arith.constant 2 : index
    %c0_9 = arith.constant 0 : index
    %c0_10 = arith.constant 0 : index
    %12 = vector.load %arg3[%c2, %c0_9, %c0_10] : memref<3x16x16xbf16, #tpu.memory_space<vmem>>, vector<1x16x16xbf16>
    %13 = vector.shape_cast %12 : vector<1x16x16xbf16> to vector<16x16xbf16>
    %cst_11 = arith.constant dense<0.000000e+00> : vector<16x128xf32>
    %14 = tpu.matmul %13, %11, %cst_11 {dimension_numbers = #tpu.dot_dimension_numbers<[1], [0], [0], [1], [0, 0, 1, 1], [], []>} : vector<16x16xbf16>, vector<16x128xbf16>, vector<16x128xf32> -> vector<16x128xf32>
    %15 = arith.addf %10, %14 : vector<16x128xf32>
    %c0_12 = arith.constant 0 : index
    %c0_13 = arith.constant 0 : index
    %16 = vector.load %arg4[%c0_12, %c0_13] : memref<16x1xf32, #tpu.memory_space<vmem>>, vector<16x1xf32>
    %17 = vector.broadcast %16 : vector<16x1xf32> to vector<16x128xf32>
    %18 = arith.addf %15, %17 : vector<16x128xf32>
    %cst_14 = arith.constant 0.000000e+00 : f32
    %19 = vector.broadcast %cst_14 : f32 to vector<16x128xf32>
    %20 = arith.maximumf %18, %19 : vector<16x128xf32>
    %c0_i32 = arith.constant 0 : i32
    %21 = arith.cmpi eq, %arg1, %c0_i32 : i32
    %22 = arith.extui %21 : i1 to i32
    %c0_i32_15 = arith.constant 0 : i32
    %23 = arith.cmpi ne, %22, %c0_i32_15 : i32
    scf.if %23 {
      %27 = tpu.iota {dimensions = array<i32: 1>} : vector<16x128xi32>
      %c16_i32 = arith.constant 16 : i32
      %28 = vector.broadcast %c16_i32 : i32 to vector<16x128xi32>
      %29 = arith.cmpi slt, %27, %28 : vector<16x128xi32>
      %cst_18 = arith.constant 0.000000e+00 : f32
      %30 = vector.broadcast %cst_18 : f32 to vector<16x128xf32>
      %31 = arith.select %29, %20, %30 : vector<16x128xi1>, vector<16x128xf32>
      %cst_19 = arith.constant dense<0.000000e+00> : vector<16xf32>
      %32 = vector.multi_reduction <add>, %31, %cst_19 [1] : vector<16x128xf32> to vector<16xf32>
      %33 = vector.shape_cast %32 : vector<16xf32> to vector<16x1xf32>
      %34 = vector.shape_cast %33 : vector<16x1xf32> to vector<1x1x16x1xf32>
      %c0_20 = arith.constant 0 : index
      %c0_21 = arith.constant 0 : index
      %c0_22 = arith.constant 0 : index
      %c0_23 = arith.constant 0 : index
      %35 = vector.load %arg5[%c0_20, %c0_21, %c0_22, %c0_23] : memref<1x1x16x1xf32, #tpu.memory_space<vmem>>, vector<1x1x16x1xf32>
      tpu.vector_store %arg5[%c0_20, %c0_21, %c0_22, %c0_23], %34 {strides = array<i32>} : memref<1x1x16x1xf32, #tpu.memory_space<vmem>>, vector<1x1x16x1xf32>,
      %36 = arith.mulf %31, %31 : vector<16x128xf32>
      %cst_24 = arith.constant dense<0.000000e+00> : vector<16xf32>
      %37 = vector.multi_reduction <add>, %36, %cst_24 [1] : vector<16x128xf32> to vector<16xf32>
      %38 = vector.shape_cast %37 : vector<16xf32> to vector<16x1xf32>
      %39 = vector.shape_cast %38 : vector<16x1xf32> to vector<1x1x16x1xf32>
      %c0_25 = arith.constant 0 : index
      %c0_26 = arith.constant 0 : index
      %c0_27 = arith.constant 0 : index
      %c0_28 = arith.constant 0 : index
      %40 = vector.load %arg6[%c0_25, %c0_26, %c0_27, %c0_28] : memref<1x1x16x1xf32, #tpu.memory_space<vmem>>, vector<1x1x16x1xf32>
      tpu.vector_store %arg6[%c0_25, %c0_26, %c0_27, %c0_28], %39 {strides = array<i32>} : memref<1x1x16x1xf32, #tpu.memory_space<vmem>>, vector<1x1x16x1xf32>,
    } else {
    }
    %c0_i32_16 = arith.constant 0 : i32
    %24 = arith.cmpi ne, %arg1, %c0_i32_16 : i32
    %25 = arith.extui %24 : i1 to i32
    %c0_i32_17 = arith.constant 0 : i32
    %26 = arith.cmpi ne, %25, %c0_i32_17 : i32
    scf.if %26 {
      %cst_18 = arith.constant dense<0.000000e+00> : vector<16xf32>
      %27 = vector.multi_reduction <add>, %20, %cst_18 [1] : vector<16x128xf32> to vector<16xf32>
      %28 = vector.shape_cast %27 : vector<16xf32> to vector<16x1xf32>
      %29 = vector.shape_cast %28 : vector<16x1xf32> to vector<1x1x16x1xf32>
      %c0_19 = arith.constant 0 : index
      %c0_20 = arith.constant 0 : index
      %c0_21 = arith.constant 0 : index
      %c0_22 = arith.constant 0 : index
      %30 = vector.load %arg5[%c0_19, %c0_20, %c0_21, %c0_22] : memref<1x1x16x1xf32, #tpu.memory_space<vmem>>, vector<1x1x16x1xf32>
      tpu.vector_store %arg5[%c0_19, %c0_20, %c0_21, %c0_22], %29 {strides = array<i32>} : memref<1x1x16x1xf32, #tpu.memory_space<vmem>>, vector<1x1x16x1xf32>,
      %31 = arith.mulf %20, %20 : vector<16x128xf32>
      %cst_23 = arith.constant dense<0.000000e+00> : vector<16xf32>
      %32 = vector.multi_reduction <add>, %31, %cst_23 [1] : vector<16x128xf32> to vector<16xf32>
      %33 = vector.shape_cast %32 : vector<16xf32> to vector<16x1xf32>
      %34 = vector.shape_cast %33 : vector<16x1xf32> to vector<1x1x16x1xf32>
      %c0_24 = arith.constant 0 : index
      %c0_25 = arith.constant 0 : index
      %c0_26 = arith.constant 0 : index
      %c0_27 = arith.constant 0 : index
      %35 = vector.load %arg6[%c0_24, %c0_25, %c0_26, %c0_27] : memref<1x1x16x1xf32, #tpu.memory_space<vmem>>, vector<1x1x16x1xf32>
      tpu.vector_store %arg6[%c0_24, %c0_25, %c0_26, %c0_27], %34 {strides = array<i32>} : memref<1x1x16x1xf32, #tpu.memory_space<vmem>>, vector<1x1x16x1xf32>,
    } else {
    }
    return
  }
  func.func @transform_0(%arg0: i32, %arg1: i32) -> (i32, i32, i32, i32) {
    %c0_i32 = arith.constant 0 : i32
    %c0_i32_0 = arith.constant 0 : i32
    %c0_i32_1 = arith.constant 0 : i32
    return %arg0, %arg1, %c0_i32, %c0_i32_0 : i32, i32, i32, i32
  }
  func.func @transform_1(%arg0: i32, %arg1: i32) -> (i32, i32, i32) {
    %c0_i32 = arith.constant 0 : i32
    %c0_i32_0 = arith.constant 0 : i32
    %c0_i32_1 = arith.constant 0 : i32
    %c0_i32_2 = arith.constant 0 : i32
    return %c0_i32, %c0_i32_0, %c0_i32_1 : i32, i32, i32
  }
  func.func @transform_2(%arg0: i32, %arg1: i32) -> (i32, i32) {
    %c0_i32 = arith.constant 0 : i32
    %c0_i32_0 = arith.constant 0 : i32
    %c0_i32_1 = arith.constant 0 : i32
    return %c0_i32, %c0_i32_0 : i32, i32
  }
  func.func @transform_3(%arg0: i32, %arg1: i32) -> (i32, i32, i32, i32) {
    %c0_i32 = arith.constant 0 : i32
    %c0_i32_0 = arith.constant 0 : i32
    %c0_i32_1 = arith.constant 0 : i32
    return %arg0, %arg1, %c0_i32, %c0_i32_0 : i32, i32, i32, i32
  }
  func.func @transform_4(%arg0: i32, %arg1: i32) -> (i32, i32, i32, i32) {
    %c0_i32 = arith.constant 0 : i32
    %c0_i32_0 = arith.constant 0 : i32
    %c0_i32_1 = arith.constant 0 : i32
    return %arg0, %arg1, %c0_i32, %c0_i32_0 : i32, i32, i32, i32
  }
}

module attributes {stable_mosaic.version = 11 : i64} {
  func.func @_apply_kernel(%arg0: i32, %arg1: i32, %arg2: memref<1x1x16x256xbf16, #tpu.memory_space<vmem>>, %arg3: memref<3x16x16xbf16, #tpu.memory_space<vmem>>, %arg4: memref<16x1xf32, #tpu.memory_space<vmem>>, %arg5: memref<16x1xf32, #tpu.memory_space<vmem>>, %arg6: memref<16x1xf32, #tpu.memory_space<vmem>>, %arg7: memref<1x8x128xf32, #tpu.memory_space<vmem>>) attributes {dimension_semantics = [#tpu.dimension_semantics<parallel>, #tpu.dimension_semantics<parallel>], iteration_bounds = array<i64: 2, 1>, scalar_prefetch = 0 : i64, scratch_operands = 0 : i64, tpu.core_type = #tpu.core_type<tc>, window_params = [{transform_indices = @transform_0, window_bounds = array<i64: 1, 1, 16, 256>}, {pipeline_mode = #tpu.pipeline_mode<synchronous>, transform_indices = @transform_1, window_bounds = array<i64: 3, 16, 16>}, {pipeline_mode = #tpu.pipeline_mode<synchronous>, transform_indices = @transform_2, window_bounds = array<i64: 16, 1>}, {pipeline_mode = #tpu.pipeline_mode<synchronous>, transform_indices = @transform_3, window_bounds = array<i64: 16, 1>}, {pipeline_mode = #tpu.pipeline_mode<synchronous>, transform_indices = @transform_4, window_bounds = array<i64: 16, 1>}, {transform_indices = @transform_5, window_bounds = array<i64: 1, 8, 128>}]} {
    %c0 = arith.constant 0 : index
    %c0_0 = arith.constant 0 : index
    %c0_1 = arith.constant 0 : index
    %c0_2 = arith.constant 0 : index
    %0 = vector.load %arg2[%c0, %c0_0, %c0_1, %c0_2] : memref<1x1x16x256xbf16, #tpu.memory_space<vmem>>, vector<1x1x16x256xbf16>
    %1 = vector.shape_cast %0 : vector<1x1x16x256xbf16> to vector<16x256xbf16>
    %2 = vector.extract_strided_slice %1 {offsets = [0, 0], sizes = [16, 128], strides = [1, 1]} : vector<16x256xbf16> to vector<16x128xbf16>
    %c0_3 = arith.constant 0 : index
    %c0_4 = arith.constant 0 : index
    %c0_5 = arith.constant 0 : index
    %3 = vector.load %arg3[%c0_3, %c0_4, %c0_5] : memref<3x16x16xbf16, #tpu.memory_space<vmem>>, vector<1x16x16xbf16>
    %4 = vector.shape_cast %3 : vector<1x16x16xbf16> to vector<16x16xbf16>
    %cst = arith.constant dense<0.000000e+00> : vector<16x128xf32>
    %5 = tpu.matmul %4, %2, %cst {dimension_numbers = #tpu.dot_dimension_numbers<[1], [0], [0], [1], [0, 0, 1, 1], [], []>} : vector<16x16xbf16>, vector<16x128xbf16>, vector<16x128xf32> -> vector<16x128xf32>
    %6 = vector.extract_strided_slice %1 {offsets = [0, 1], sizes = [16, 128], strides = [1, 1]} : vector<16x256xbf16> to vector<16x128xbf16>
    %c1 = arith.constant 1 : index
    %c0_6 = arith.constant 0 : index
    %c0_7 = arith.constant 0 : index
    %7 = vector.load %arg3[%c1, %c0_6, %c0_7] : memref<3x16x16xbf16, #tpu.memory_space<vmem>>, vector<1x16x16xbf16>
    %8 = vector.shape_cast %7 : vector<1x16x16xbf16> to vector<16x16xbf16>
    %cst_8 = arith.constant dense<0.000000e+00> : vector<16x128xf32>
    %9 = tpu.matmul %8, %6, %cst_8 {dimension_numbers = #tpu.dot_dimension_numbers<[1], [0], [0], [1], [0, 0, 1, 1], [], []>} : vector<16x16xbf16>, vector<16x128xbf16>, vector<16x128xf32> -> vector<16x128xf32>
    %10 = arith.addf %5, %9 : vector<16x128xf32>
    %11 = vector.extract_strided_slice %1 {offsets = [0, 2], sizes = [16, 128], strides = [1, 1]} : vector<16x256xbf16> to vector<16x128xbf16>
    %c2 = arith.constant 2 : index
    %c0_9 = arith.constant 0 : index
    %c0_10 = arith.constant 0 : index
    %12 = vector.load %arg3[%c2, %c0_9, %c0_10] : memref<3x16x16xbf16, #tpu.memory_space<vmem>>, vector<1x16x16xbf16>
    %13 = vector.shape_cast %12 : vector<1x16x16xbf16> to vector<16x16xbf16>
    %cst_11 = arith.constant dense<0.000000e+00> : vector<16x128xf32>
    %14 = tpu.matmul %13, %11, %cst_11 {dimension_numbers = #tpu.dot_dimension_numbers<[1], [0], [0], [1], [0, 0, 1, 1], [], []>} : vector<16x16xbf16>, vector<16x128xbf16>, vector<16x128xf32> -> vector<16x128xf32>
    %15 = arith.addf %10, %14 : vector<16x128xf32>
    %c0_12 = arith.constant 0 : index
    %c0_13 = arith.constant 0 : index
    %16 = vector.load %arg4[%c0_12, %c0_13] : memref<16x1xf32, #tpu.memory_space<vmem>>, vector<16x1xf32>
    %17 = vector.broadcast %16 : vector<16x1xf32> to vector<16x128xf32>
    %18 = arith.addf %15, %17 : vector<16x128xf32>
    %cst_14 = arith.constant 0.000000e+00 : f32
    %19 = vector.broadcast %cst_14 : f32 to vector<16x128xf32>
    %20 = arith.maximumf %18, %19 : vector<16x128xf32>
    %c0_15 = arith.constant 0 : index
    %c0_16 = arith.constant 0 : index
    %21 = vector.load %arg5[%c0_15, %c0_16] : memref<16x1xf32, #tpu.memory_space<vmem>>, vector<16x1xf32>
    %22 = vector.broadcast %21 : vector<16x1xf32> to vector<16x128xf32>
    %23 = arith.mulf %20, %22 : vector<16x128xf32>
    %c0_17 = arith.constant 0 : index
    %c0_18 = arith.constant 0 : index
    %24 = vector.load %arg6[%c0_17, %c0_18] : memref<16x1xf32, #tpu.memory_space<vmem>>, vector<16x1xf32>
    %25 = vector.broadcast %24 : vector<16x1xf32> to vector<16x128xf32>
    %26 = arith.addf %23, %25 : vector<16x128xf32>
    %27 = vector.extract_strided_slice %26 {offsets = [0, 0], sizes = [8, 128], strides = [1, 1]} : vector<16x128xf32> to vector<8x128xf32>
    %c0_19 = arith.constant 0 : index
    %c0_20 = arith.constant 0 : index
    %c0_21 = arith.constant 0 : index
    %28 = vector.load %arg7[%c0_19, %c0_20, %c0_21] : memref<1x8x128xf32, #tpu.memory_space<vmem>>, vector<1x8x128xf32>
    %29 = vector.shape_cast %28 : vector<1x8x128xf32> to vector<8x128xf32>
    %30 = vector.shape_cast %27 : vector<8x128xf32> to vector<1x8x128xf32>
    tpu.vector_store %arg7[%c0_19, %c0_20, %c0_21], %30 {strides = array<i32>} : memref<1x8x128xf32, #tpu.memory_space<vmem>>, vector<1x8x128xf32>,
    return
  }
  func.func @transform_0(%arg0: i32, %arg1: i32) -> (i32, i32, i32, i32) {
    %c0_i32 = arith.constant 0 : i32
    %c0_i32_0 = arith.constant 0 : i32
    %c0_i32_1 = arith.constant 0 : i32
    return %arg0, %arg1, %c0_i32, %c0_i32_0 : i32, i32, i32, i32
  }
  func.func @transform_1(%arg0: i32, %arg1: i32) -> (i32, i32, i32) {
    %c0_i32 = arith.constant 0 : i32
    %c0_i32_0 = arith.constant 0 : i32
    %c0_i32_1 = arith.constant 0 : i32
    %c0_i32_2 = arith.constant 0 : i32
    return %c0_i32, %c0_i32_0, %c0_i32_1 : i32, i32, i32
  }
  func.func @transform_2(%arg0: i32, %arg1: i32) -> (i32, i32) {
    %c0_i32 = arith.constant 0 : i32
    %c0_i32_0 = arith.constant 0 : i32
    %c0_i32_1 = arith.constant 0 : i32
    return %c0_i32, %c0_i32_0 : i32, i32
  }
  func.func @transform_3(%arg0: i32, %arg1: i32) -> (i32, i32) {
    %c0_i32 = arith.constant 0 : i32
    %c0_i32_0 = arith.constant 0 : i32
    %c0_i32_1 = arith.constant 0 : i32
    return %c0_i32, %c0_i32_0 : i32, i32
  }
  func.func @transform_4(%arg0: i32, %arg1: i32) -> (i32, i32) {
    %c0_i32 = arith.constant 0 : i32
    %c0_i32_0 = arith.constant 0 : i32
    %c0_i32_1 = arith.constant 0 : i32
    return %c0_i32, %c0_i32_0 : i32, i32
  }
  func.func @transform_5(%arg0: i32, %arg1: i32) -> (i32, i32, i32) {
    %c0_i32 = arith.constant 0 : i32
    %c0_i32_0 = arith.constant 0 : i32
    return %arg0, %c0_i32, %arg1 : i32, i32, i32
  }
}

</mosaic_0001>

<bundles_post_ra>
// kernel: textconv_forward.2
= control target key start
LH: loop header
LB: loop body
LE: loop exit
PB: predicated region body
PF: predicated region fallthrough
CT: control target
= control target key end

     0   :  { %s788_s15 = smov 0   ;;  %s790_s16 = smov 0   ;;  %s850_s0 = inlined_call_operand.vmem [shape: bf16[2,1,16,256], index: 0, kind: input, shape index: {}]   ;;  %s851_s1 = inlined_call_operand.vmem [shape: bf16[3,16,16], index: 1, kind: input, shape index: {}]   ;;  %s852_s2 = inlined_call_operand.vmem [shape: f32[16,1], index: 2, kind: input, shape index: {}]   ;;  %s853_s3 = inlined_call_operand.vmem [shape: f32[2,1,16,1], index: 3, kind: output, shape index: {0}]   ;;  %s854_s4 = inlined_call_operand.vmem [shape: f32[2,1,16,1], index: 4, kind: output, shape index: {1}]  }
   0x1   :  { %s792_s17 = smov 0  }
   0x2 LB: > { %s27_s18 = sadd.s32 1, %s752_s16  ;;  %p649_p0 = scmp.ge.s32.totalorder %s756_s17, 1  ;;  %s756_s17 = sphi %s792_s17, %s15_s17   ;;  %s752_s16 = sphi %s790_s16, %s856_s16   ;;  %s748_s15 = sphi %s788_s15, %s855_s15  }
   0x3   : > { %p29_p1 = scmp.ge.s32.totalorder %s27_s18, 2  ;;  %p187_p2 = scmp.lt.s32.totalorder %s756_s17, 3 }
   0x5   : > { %s858_s18 = smov (%p29_p1, %s27_s18), 0  ;;  %p188_p3 = pnand %p649_p0, %p187_p2 }
   0x6   : > { %p230_p4 = scmp.lt.s32.totalorder (!%p188_p3), %s748_s15, 1  ;;  %s760_s23 = smov (!%p188_p3), 126  }
   0x7   : > { %191 = sbr.rel (%p188_p3) target bundleno = 494 (0x1ee), region = 32  ;;  %s761_s24 = smov (!%p188_p3), 127  }
   0xc   : > { %v758_v0 = vmov 0.0   ;;  %s860_s15 = smov (!%p230_p4, %s748_s15), 1  ;;  %vm759_vm0 = vmmov 0   ;;  %v732_v3 = vld [vmem:[%s851_s1] sm:$0xff]   ;;  %vm285_vm1 = vcmask 130048   ;;  %v762_v4 = vmov 0  }
   0xd   : > { %679 = vmatprep.subr.bf16.mxu0 %v758_v0  ;;  %685 = vmatprep.subr.bf16.mxu1 %v758_v0  ;;  %s808_s19 = sshll.u32 %s860_s15, 4  ;;  %v441_v5 = vld [vmem:[%s852_s2] sm:$0xff]  ;;  %v442_v6 = vld [vmem:[%s852_s2 + $0x8] sm:$0xff]  ;;  %vm282_vm2 = vcmask 1039360   ;;  %vm392_vm3 = vcmask 1031168   ;;  %v733_v14 = vld [vmem:[%s851_s1 + $0x10] sm:$0xff]   ;;  %v461_v22 = vlaneseq }
   0xe   : > { %681 = vmatprep.mubr.msk.bf16.mxu0 %vm759_vm0, %v758_v0  ;;  %687 = vmatprep.mubr.msk.bf16.mxu1 %vm759_vm0, %v758_v0  ;;  %s238_s22 = scalar_lea.vmem %s850_s0, %s808_s19  ;;  %v731_v12 = vld [vmem:[%s851_s1 + $0x8] sm:$0xff]   ;;  %s247_s11 = scalar_lea.vmem %s853_s3, %s808_s19  ;;  %vm470_vm5 = vcmask 7168  }
   0xf   : > { %v728_v1 = vld [vmem:[%s238_s22] ss:$8 sps:$4 sm:$0xff]   ;;  %v730_v2 = vld [vmem:[%s238_s22 + $0x4] ss:$8 sps:$4 sm:$0xff]   ;;  %726 = vset.pattern.permute.xlu0 %v762_v4  ;;  %727 = vset.pattern.permute.xlu1 %v762_v4  ;;  %v462_v27 = vand.u32 127, %v461_v22  ;;  %s256_s14 = scalar_lea.vmem %s854_s4, %s808_s19 }
  0x10   : > { %388 = vrot.lane.b32.xlu1 %v728_v1, %s760_s23  ;;  %278 = vrot.lane.b32.xlu0 %v728_v1, %s761_s24 }
  0x11   : > { %686 = vmatpush3.bf16.msra.mxu1 %v728_v1  ;;  %vm463_vm4 = vcmp.lt.s32.totalorder %v462_v27, 16 }
  0x14   : > { %390 = vrot.lane.b32.xlu1 %v730_v2, %s760_s23  ;;  %280 = vrot.lane.b32.xlu0 %v730_v2, %s761_s24 }
  0x15   : > { %688 = vmatmul.mubr.msk.bf16.vlgmr.msra.gmra.mxu1 %vm285_vm1, %v732_v3 }
  0x18   : > { %445 = vperm.xlu0 %726, %v441_v5   ;;  %450 = vperm.xlu1 %727, %v442_v6  }
  0x82   : > { %v389_v7 = vpop.permute.xlu1 %388  ;;  %v279_v8 = vpop.permute.xlu0 %278 }
  0x86   : > { %v391_v9 = vpop.permute.xlu1 %390  ;;  %v281_v10 = vpop.permute.xlu0 %280 }
  0x87   : > { %v283_v11 = vsel %vm282_vm2, %v279_v8, %v281_v10  ;;  %v393_v13 = vsel %vm392_vm3, %v389_v7, %v391_v9 }
  0x88   : > { %680 = vmatpush3.bf16.msra.mxu0 %v283_v11 }
  0x89   : > { %691 = vmatprep.subr.bf16.mxu0 %v758_v0 }
  0x8b   : > { %682 = vmatmul.mubr.msk.bf16.vlgmr.msra.gmra.mxu0 %vm285_vm1, %v731_v12 }
  0x8c   : > { %692 = vmatpush3.bf16.msra.mxu0 %v393_v13  ;;  %693 = vmatprep.mubr.msk.bf16.mxu0 %vm759_vm0, %v758_v0 }
  0x93   : > { %694 = vmatmul.mubr.msk.bf16.vlgmr.msra.gmra.mxu0 %vm285_vm1, %v733_v14  ;;  %v446_v26 = vpop.permute.xlu0 %445  ;;  %v451_v33 = vpop.permute.xlu1 %450 }
  0xd5   : > { %v373_v15 = vpop.f32.mrf.mxu1 }
  0xd7   : > { %v689_v16 = vpop.f32.mrf.mxu1 }
  0xd9   : > { %v376_v17 = vpop.f32.mrf.mxu1 }
  0xdb   : > { %v690_v18 = vpop.f32.mrf.mxu1 }
 0x14b   : > { %v323_v19 = vpop.f32.mrf.mxu0 }
 0x14c   : > { %v374_v24 = vadd.f32 %v373_v15, %v323_v19 }
 0x14d   : > { %v683_v20 = vpop.f32.mrf.mxu0 }
 0x14f   : > { %v326_v21 = vpop.f32.mrf.mxu0 }
 0x150   : > { %v377_v30 = vadd.f32 %v376_v17, %v326_v21 }
 0x151   : > { %v684_v23 = vpop.f32.mrf.mxu0 }
 0x153   : > { %v432_v25 = vpop.f32.mrf.mxu0 }
 0x154   : > { %v439_v28 = vadd.f32 %v432_v25, %v374_v24 }
 0x155   : > { %v695_v29 = vpop.f32.mrf.mxu0 }
 0x156   : > { %v453_v31 = vadd.f32 %v446_v26, %v439_v28 }
 0x157   : > { %v435_v32 = vpop.f32.mrf.mxu0 }
 0x158   : > { %v455_v34 = vmax.f32 %v453_v31, 0.0  ;;  %v440_v35 = vadd.f32 %v435_v32, %v377_v30 }
 0x159   : > { %v696_v36 = vpop.f32.mrf.mxu0 }
 0x15a   : > { %v454_v37 = vadd.f32 %v451_v33, %v440_v35  ;;  %v464_v38 = vsel %vm463_vm4, %v455_v34, 0.0 }
 0x15b   : > { %466 = vadd.xlane.f32.xlu1 %v464_v38  ;;  %v473_v42 = vmul.f32 %v464_v38, %v464_v38 }
 0x15c   : > { %v456_v39 = vmax.f32 %v454_v37, 0.0 }
 0x15e   : > { %v465_v40 = vsel %vm463_vm4, %v456_v39, 0.0 }
 0x15f   : > { %468 = vadd.xlane.f32.xlu0 %v465_v40  ;;  %v474_v41 = vmul.f32 %v465_v40, %v465_v40 }
 0x161   : > { %477 = vadd.xlane.f32.xlu1 %v474_v41 }
 0x163   : > { %475 = vadd.xlane.f32.xlu0 %v473_v42 }
 0x1e4   : > { %v467_v43 = vpop.xlane.xlu1 %466 }
 0x1e5   : > { %471 = vst.msk [vmem:[%s247_s11] sm:$0xff] %vm470_vm5, %v467_v43 }
 0x1e8   : > { %v469_v44 = vpop.xlane.xlu0 %468 }
 0x1e9   : > { %472 = vst.msk [vmem:[%s247_s11 + $0x8] sm:$0xff] %vm470_vm5, %v469_v44 }
 0x1ea   : > { %v478_v45 = vpop.xlane.xlu1 %477 }
 0x1eb   : > { %480 = vst.msk [vmem:[%s256_s14 + $0x8] sm:$0xff] %vm470_vm5, %v478_v45 }
 0x1ec   : > { %v476_v46 = vpop.xlane.xlu0 %475 }
 0x1ed   : > { %479 = vst.msk [vmem:[%s256_s14] sm:$0xff] %vm470_vm5, %v476_v46 }
 0x1ee PF: > { %s15_s17 = sadd.s32 1, %s756_s17   ;;  %s855_s15 = smov %s752_s16 }
 0x1ef   : > { %p12_p5 = scmp.ge.s32.totalorder %s15_s17, 4   ;;  %s856_s16 = smov %s858_s18 }
 0x1f1   :  { %14 = sbr.rel (!%p12_p5) target bundleno = 2 (0x2), region = 84 }

// kernel: textconv_forward.3
= control target key start
LH: loop header
LB: loop body
LE: loop exit
PB: predicated region body
PF: predicated region fallthrough
CT: control target
= control target key end

     0   :  { %10 = vsyncpa [#allocation3], 0  ;;  %s900_s0 = inlined_call_operand.vmem [shape: bf16[2,1,16,256], index: 0, kind: input, shape index: {}]   ;;  %s901_s1 = inlined_call_operand.vmem [shape: bf16[3,16,16], index: 1, kind: input, shape index: {}]   ;;  %s902_s2 = inlined_call_operand.vmem [shape: f32[16,1], index: 2, kind: input, shape index: {}]   ;;  %s903_s3 = inlined_call_operand.vmem [shape: f32[16,1], index: 3, kind: input, shape index: {}]   ;;  %s904_s4 = inlined_call_operand.vmem [shape: f32[16,1], index: 4, kind: input, shape index: {}]   ;;  %s905_s5 = inlined_call_operand.hbm [shape: f32[2,8,128], index: 5, kind: output, shape index: {}]  }
   0x1   :  { %12 = vsyncpa [#allocation3 + $0x1], 0  ;;  %s777_s18 = smov 0   ;;  %s779_s19 = smov 0  }
   0x2   :  { %s781_s20 = smov 0   ;;  %s783_s21 = smov 0  }
   0x3   :  { %s785_s22 = smov 0   ;;  %s787_s23 = smov 0  }
   0x4 LB: > { %s546_s24 = sadd.s32 4294967295, %s739_s23   ;;  %s547_s25 = sadd.s32 4294967294, %s739_s23   ;;  %s739_s23 = sphi %s787_s23, %s18_s23   ;;  %s735_s22 = sphi %s785_s22, %s912_s22   ;;  %s731_s21 = sphi %s783_s21, %s911_s21   ;;  %s727_s20 = sphi %s781_s20, %s910_s20   ;;  %s723_s19 = sphi %s779_s19, %s909_s19   ;;  %s719_s18 = sphi %s777_s18, %s908_s18  }
   0x5   : > { %s30_s26 = sadd.s32 1, %s735_s22  ;;  %s151_s27 = sadd.s32 1, %s727_s20 }
   0x6   : > { %p32_p0 = scmp.ge.s32.totalorder %s30_s26, 2  ;;  %p161_p1 = scmp.ne.s32.totalorder %s727_s20, %s723_s19 }
   0x7   : > { %p162_p2 = scmp.eq.s32.totalorder %s546_s24, 1  ;;  %p167_p3 = scmp.ne.s32.totalorder %s723_s19, %s719_s18 }
   0x8   : > { %s914_s26 = smov (%p32_p0, %s30_s26), 0  ;;  %p168_p5 = scmp.eq.s32.totalorder %s547_s25, 1 }
   0x9   : > { %p817_p4 = por %p162_p2, %p161_p1  ;;  %s146_s29 = ssub.s32 %s735_s22, %s914_s26 }
   0xa   : > { %p550_p6 = scmp.ge.s32.totalorder %s739_s23, 1  ;;  %p149_p7 = scmp.eq.s32.totalorder %s146_s29, 0 }
   0xb   : > { %p824_p8 = por %p168_p5, %p167_p3  ;;  %p210_p9 = scmp.lt.s32.totalorder %s739_s23, 3 }
   0xc   : > { %s830_s6 = scalar_select %p149_p7, %s727_s20, %s151_s27  }
   0xd   : > { %p211_p10 = pnand %p550_p6, %p210_p9 }
   0xe   : > { %p242_p11 = scmp.lt.s32.totalorder (!%p211_p10), %s731_s21, 1  ;;  %s743_s12 = smov (!%p211_p10), 126  }
   0xf   : > { %214 = sbr.rel (%p211_p10) target bundleno = 372 (0x174), region = 40  ;;  %s744_s13 = smov (!%p211_p10), 127  }
  0x10   : > { %s746_s29 = smov (!%p211_p10), [#allocation2]  }
  0x14   : > { %v741_v0 = vmov 0.0   ;;  %s243_s7 = scalar_select %p242_p11, %s731_s21, 1  ;;  %vm742_vm0 = vmmov 0   ;;  %v661_v3 = vld [vmem:[%s901_s1] sm:$0xff]   ;;  %vm279_vm1 = vcmask 130048   ;;  %v745_v4 = vmov 0  }
  0x15   : > { %577 = vmatprep.subr.bf16.mxu0 %v741_v0  ;;  %583 = vmatprep.subr.bf16.mxu1 %v741_v0  ;;  %v439_v5 = vld [vmem:[%s903_s3] sm:$0xff]  ;;  %vm276_vm2 = vcmask 1039360   ;;  %vm384_vm3 = vcmask 1031168   ;;  %v660_v13 = vld [vmem:[%s901_s1 + $0x8] sm:$0xff]   ;;  %v662_v15 = vld [vmem:[%s901_s1 + $0x10] sm:$0xff]  }
  0x16   : > { %579 = vmatprep.mubr.msk.bf16.mxu0 %vm742_vm0, %v741_v0  ;;  %585 = vmatprep.mubr.msk.bf16.mxu1 %vm742_vm0, %v741_v0  ;;  %s570_s8 = sshll.u32 %s243_s7, 4  ;;  %v431_v6 = vld [vmem:[%s902_s2] sm:$0xff]  ;;  %s667_s7 = sshll.u32 %s746_s29, 4  ;;  %s668_s7 = int_to_ptr.vmem [resolvable:$false] %s667_s7 }
  0x17   : > { %s250_s11 = scalar_lea.vmem %s900_s0, %s570_s8  ;;  %656 = vset.pattern.permute.xlu1 %v745_v4  ;;  %655 = vset.pattern.permute.xlu0 %v745_v4  ;;  %v446_v7 = vld [vmem:[%s904_s4] sm:$0xff] }
  0x18   : > { %v657_v1 = vld [vmem:[%s250_s11] ss:$8 sps:$4 sm:$0xff]   ;;  %v659_v2 = vld [vmem:[%s250_s11 + $0x4] ss:$8 sps:$4 sm:$0xff]   ;;  %s239_s11 = sand.u32 1, %s723_s19  }
  0x19   : > { %380 = vrot.lane.b32.xlu1 %v657_v1, %s743_s12  ;;  %272 = vrot.lane.b32.xlu0 %v657_v1, %s744_s13  ;;  %s455_s25 = scalar_lea.sflag [#allocation3], %s239_s11 }
  0x1a   : > { %584 = vmatpush3.bf16.msra.mxu1 %v657_v1 }
  0x1d   : > { %382 = vrot.lane.b32.xlu1 %v659_v2, %s743_s12  ;;  %274 = vrot.lane.b32.xlu0 %v659_v2, %s744_s13  ;;  %s551_s12 = sshll.u32 %s239_s11, 3  ;;  %s567_s13 = sshll.u32 %s731_s21, 7 }
  0x1e   : > { %586 = vmatmul.mubr.msk.bf16.vlgmr.msra.gmra.mxu1 %vm279_vm1, %v661_v3  ;;  %s241_s14 = scalar_lea.vmem [#allocation2], %s551_s12  ;;  %s467_s24 = scalar_lea.hbm %s905_s5, %s567_s13 }
  0x1f   : > { %s469_s15 = sshll.u32 %s241_s14, 4  ;;  %s669_s21 = scalar_lea.vmem %s668_s7, 256  ;;  %s470_s15 = int_to_ptr.vmem [resolvable:$true] %s469_s15 }
  0x20   : > { %s663_s27 = scalar_lea.vmem %s470_s15, 128  ;;  %p670_p1 = scmp.lt.s32.totalorder %s470_s15, %s668_s7 }
  0x21   : > { %442 = vperm.xlu1 %656, %v439_v5   ;;  %434 = vperm.xlu0 %655, %v431_v6   ;;  %p664_p12 = scmp.ne.s32.totalorder %s470_s15, %s663_s27  ;;  %p671_p2 = scmp.lt.s32.totalorder %s669_s21, %s663_s27 }
  0x23   : > { %p665_p13 = pnand %p664_p12, %p817_p4  ;;  %p672_p3 = por %p671_p2, %p670_p1 }
  0x25   : > { %449 = vperm.xlu1 %656, %v446_v7   ;;  %p666_p0 = pneg %p665_p13 }
  0x27   : > { %p673_p5 = pnand %p672_p3, %p666_p0 }
  0x8b   : > { %v381_v8 = vpop.permute.xlu1 %380  ;;  %v273_v9 = vpop.permute.xlu0 %272 }
  0x8f   : > { %v383_v10 = vpop.permute.xlu1 %382  ;;  %v275_v11 = vpop.permute.xlu0 %274 }
  0x90   : > { %v277_v12 = vsel %vm276_vm2, %v273_v9, %v275_v11  ;;  %v385_v14 = vsel %vm384_vm3, %v381_v8, %v383_v10 }
  0x91   : > { %578 = vmatpush3.bf16.msra.mxu0 %v277_v12 }
  0x92   : > { %589 = vmatprep.subr.bf16.mxu0 %v741_v0 }
  0x94   : > { %580 = vmatmul.mubr.msk.bf16.vlgmr.msra.gmra.mxu0 %vm279_vm1, %v660_v13 }
  0x95   : > { %590 = vmatpush3.bf16.msra.mxu0 %v385_v14  ;;  %591 = vmatprep.mubr.msk.bf16.mxu0 %vm742_vm0, %v741_v0 }
  0x9c   : > { %592 = vmatmul.mubr.msk.bf16.vlgmr.msra.gmra.mxu0 %vm279_vm1, %v662_v15  ;;  %v435_v26 = vpop.permute.xlu0 %434  ;;  %v443_v28 = vpop.permute.xlu1 %442 }
  0xa0   : > { %v450_v35 = vpop.permute.xlu1 %449 }
  0xde   : > { %v366_v16 = vpop.f32.mrf.mxu1 }
  0xe0   : > { %v587_v17 = vpop.f32.mrf.mxu1 }
  0xe2   : > { %v369_v18 = vpop.f32.mrf.mxu1 }
  0xe4   : > { %v588_v19 = vpop.f32.mrf.mxu1 }
 0x154   : > { %v317_v20 = vpop.f32.mrf.mxu0 }
 0x155   : > { %v367_v24 = vadd.f32 %v366_v16, %v317_v20 }
 0x156   : > { %v581_v21 = vpop.f32.mrf.mxu0 }
 0x158   : > { %v320_v22 = vpop.f32.mrf.mxu0 }
 0x15a   : > { %v582_v23 = vpop.f32.mrf.mxu0 }
 0x15c   : > { %v424_v25 = vpop.f32.mrf.mxu0 }
 0x15d   : > { %v430_v27 = vadd.f32 %v424_v25, %v367_v24 }
 0x15e   : > { %v593_v29 = vpop.f32.mrf.mxu0 }
 0x15f   : > { %v437_v30 = vadd.f32 %v435_v26, %v430_v27 }
 0x160   : > { %v427_v31 = vpop.f32.mrf.mxu0 }
 0x161   : > { %v438_v32 = vmax.f32 %v437_v30, 0.0 }
 0x162   : > { %v594_v33 = vpop.f32.mrf.mxu0 }
 0x163   : > { %v445_v34 = vmul.f32 %v443_v28, %v438_v32 }
 0x165   : > { %v452_v36 = vadd.f32 %v450_v35, %v445_v34 }
 0x167   : > { %453 = vst [vmem:[%s241_s14] sm:$0xff] %v452_v36 }
 0x168   : > { %676 = shalt.err (!%p673_p5)
}
 0x169   : > { %s677_s8 = scalar_lea.hbm %s467_s24, 128  ;;  %s681_s11 = scalar_lea.hbm %s905_s5, 256 }
 0x16a   : > { %p678_p6 = scmp.ne.s32.totalorder %s467_s24, %s677_s8  ;;  %p682_p10 = scmp.lt.s32.totalorder %s467_s24, %s905_s5 }
 0x16b   : > { %p683_p11 = scmp.lt.s32.totalorder %s681_s11, %s677_s8 }
 0x16c   : > { %p679_p7 = pnand %p678_p6, %p817_p4 }
 0x16d   : > { %p684_p12 = por %p683_p11, %p682_p10 }
 0x16e   : > { %p680_p9 = pneg %p679_p7 }
 0x170   : > { %p685_p13 = pnand %p684_p12, %p680_p9 }
 0x172   : > { %688 = shalt.err (!%p685_p13)
}
 0x173   : > { %595 = dma.vmem_to_hbm [thread:$0]  (%p817_p4), %s470_s15, 128, %s467_s24, %s455_s25  }
 0x174 PF: > { %p601_p0 = scmp.ge.s32.totalorder %s739_s23, 2  ;;  %s481_s14 = sand.u32 1, %s719_s18  }
 0x175   : > { %s482_s16 = scalar_lea.sflag [#allocation3], %s481_s14 }
 0x176   : > { %p598_p1 = pnand %p601_p0, %p824_p8 }
 0x178   : > { %p599_p2 = pneg %p598_p1 }
 0x17a   : > { %714 = dma.done.wait (%p599_p2), %s482_s16, 128  }
 0x17b   : > { %716 = vsyncadd (%p599_p2), %s482_s16, 4294967168  ;;  %s18_s23 = sadd.s32 1, %s739_s23   ;;  %s908_s18 = smov %s723_s19 }
 0x17c   : > { %p15_p3 = scmp.ge.s32.totalorder %s18_s23, 4   ;;  %s909_s19 = smov %s727_s20 }
 0x17d   : > { %s910_s20 = smov %s830_s6  ;;  %s911_s21 = smov %s735_s22 }
 0x17e   : > { %s912_s22 = smov %s914_s26  ;;  %17 = sbr.rel (!%p15_p3) target bundleno = 4 (0x4), region = 77 }
 0x183   :  { %487 = vsyncpa [#allocation3], 1 }
 0x184   :  { %489 = vsyncpa [#allocation3 + $0x1], 1 }

</bundles_post_ra>
